<compile_context>
chip_gen: v7x
topology: tpu7x:2x2x1
jax: 0.10.0
libtpu: 0.0.40
codegen_flags: <defaults>
</compile_context>

<pallas_src>
import functools

import jax
import jax.numpy as jnp
from jax.experimental import pallas as pl
from jax.experimental.pallas import tpu as pltpu

_LANE = 128
_VMEM_BUDGET = 32 * 1024 * 1024   # conservative per-call working-set target (v7x: 64 MiB phys)
_VMEM_LIMIT = 48 * 1024 * 1024    # explicit scoped-VMEM limit handed to Mosaic


def _round_up(x: int, m: int) -> int:
    return ((x + m - 1) // m) * m


def _pad_nodes(n: int) -> int:
    # Large graphs padded to 512 so 512-row/contraction tiles divide evenly.
    return _round_up(n, 512) if n > 512 else _round_up(n, _LANE)


# ---------------------------------------------------------------------------
# Pallas kernels:  out = act(A @ B + bias)  with f32 accumulation
# ---------------------------------------------------------------------------
def _mm_single_kernel(a_ref, b_ref, bias_ref, o_ref, *, apply_relu: bool):
    # a_ref: (tm, K)   b_ref: (K, Cout) resident   bias_ref: (1, Cout) f32
    # Single K step: no scratch accumulator, write result directly.
    h = jnp.dot(a_ref[...], b_ref[...], preferred_element_type=jnp.float32)
    h = h + bias_ref[...]
    if apply_relu:
        h = jnp.maximum(h, 0.0)
    o_ref[...] = h.astype(o_ref.dtype)


def _mm_resident_kernel(a_ref, b_ref, bias_ref, o_ref, acc_ref, *, apply_relu: bool, tk: int):
    # a_ref: (tm, tk)  b_ref: (K, Cout) resident (constant index_map -> DMA'd once)
    # acc_ref: (tm, Cout) f32 accumulator across the K grid axis.
    k = pl.program_id(1)

    @pl.when(k == 0)
    def _():
        acc_ref[...] = jnp.zeros_like(acc_ref)

    start = pl.multiple_of(k * tk, tk)
    acc_ref[...] += jnp.dot(
        a_ref[...], b_ref[pl.ds(start, tk), :], preferred_element_type=jnp.float32
    )

    @pl.when(k == pl.num_programs(1) - 1)
    def _():
        h = acc_ref[...] + bias_ref[...]
        if apply_relu:
            h = jnp.maximum(h, 0.0)
        o_ref[...] = h.astype(o_ref.dtype)


def _mm_stream_kernel(a_ref, b_ref, bias_ref, o_ref, acc_ref, *, apply_relu: bool):
    # Fallback: B streamed as (tk, Cout) K-slabs (used only when B cannot be resident).
    k = pl.program_id(1)

    @pl.when(k == 0)
    def _():
        acc_ref[...] = jnp.zeros_like(acc_ref)

    acc_ref[...] += jnp.dot(a_ref[...], b_ref[...], preferred_element_type=jnp.float32)

    @pl.when(k == pl.num_programs(1) - 1)
    def _():
        h = acc_ref[...] + bias_ref[...]
        if apply_relu:
            h = jnp.maximum(h, 0.0)
        o_ref[...] = h.astype(o_ref.dtype)


def _choose_plan(M, K, Cout, a_item, b_item, o_item):
    """Pick (mode, tm, tk) fitting the VMEM budget; prefer resident-B / big tiles."""
    tms = [t for t in (512, 256, 128) if M % t == 0] or [M]
    # Prefer a parallel extent >= 2 (v7x megacore), then the largest tile.
    tms.sort(key=lambda t: (M // t >= 2, t), reverse=True)
    tks = sorted([t for t in (512, 256, 128) if K % t == 0] or [K], reverse=True)
    bias_bytes = 2 * Cout * 4

    # 1) single K step: A row slab + resident B, no f32 scratch.
    for tm in tms:
        need = 2 * tm * K * a_item + 2 * K * Cout * b_item + 2 * tm * Cout * o_item + bias_bytes
        if need <= _VMEM_BUDGET:
            return "single", tm, K
    # 2) K grid for A, B fully resident (DMA'd once).
    for tm in tms:
        for tk in tks:
            need = (2 * tm * tk * a_item + 2 * K * Cout * b_item
                    + 2 * tm * Cout * o_item + tm * Cout * 4 + bias_bytes)
            if need <= _VMEM_BUDGET:
                return "resident", tm, tk
    # 3) fallback: stream B as K-slabs.
    for tm in tms:
        for tk in tks:
            need = (2 * tm * tk * a_item + 2 * tk * Cout * b_item
                    + 2 * tm * Cout * o_item + tm * Cout * 4 + bias_bytes)
            if need <= _VMEM_BUDGET:
                return "stream", tm, tk
    # TODO(synk): add an output-column grid axis for very large Cout instead of this fallback.
    return "stream", tms[-1], tks[-1]


def matmul_bias_act(a, b, bias, *, apply_relu: bool, out_dtype):
    """out = act(a @ b + bias), f32 accumulation.

    a: (M, K), b: (K, Cout), bias: (1, Cout) f32.  All dims pre-padded to 128 multiples.
    """
    M, K = a.shape
    K2, Cout = b.shape
    assert K == K2 and bias.shape == (1, Cout)
    assert M % _LANE == 0 and K % _LANE == 0 and Cout % _LANE == 0

    a_item = a.dtype.itemsize
    b_item = b.dtype.itemsize
    o_item = jnp.dtype(out_dtype).itemsize
    mode, tm, tk = _choose_plan(M, K, Cout, a_item, b_item, o_item)

    cost = pl.CostEstimate(
        flops=2 * M * K * Cout,
        transcendentals=0,
        bytes_accessed=M * K * a_item + K * Cout * b_item + Cout * 4 + M * Cout * o_item,
    )
    out_shape = jax.ShapeDtypeStruct((M, Cout), out_dtype)

    if mode == "single":
        kernel = functools.partial(_mm_single_kernel, apply_relu=apply_relu)
        grid_spec = pltpu.PrefetchScalarGridSpec(
            num_scalar_prefetch=0,
            grid=(M // tm,),
            in_specs=[
                pl.BlockSpec((tm, K), lambda i: (i, 0)),        # A row slab
                pl.BlockSpec((K, Cout), lambda i: (0, 0)),      # B resident
                pl.BlockSpec((1, Cout), lambda i: (0, 0)),      # bias
            ],
            out_specs=pl.BlockSpec((tm, Cout), lambda i: (i, 0)),
        )
        dims = ("parallel",)
    elif mode == "resident":
        kernel = functools.partial(_mm_resident_kernel, apply_relu=apply_relu, tk=tk)
        grid_spec = pltpu.PrefetchScalarGridSpec(
            num_scalar_prefetch=0,
            grid=(M // tm, K // tk),                            # reduction axis last
            in_specs=[
                pl.BlockSpec((tm, tk), lambda i, k: (i, k)),    # A row/K tile
                pl.BlockSpec((K, Cout), lambda i, k: (0, 0)),   # B resident (fetched once)
                pl.BlockSpec((1, Cout), lambda i, k: (0, 0)),   # bias
            ],
            out_specs=pl.BlockSpec((tm, Cout), lambda i, k: (i, 0)),
            scratch_shapes=[pltpu.VMEM((tm, Cout), jnp.float32)],
        )
        dims = ("parallel", "arbitrary")
    else:  # stream
        kernel = functools.partial(_mm_stream_kernel, apply_relu=apply_relu)
        grid_spec = pltpu.PrefetchScalarGridSpec(
            num_scalar_prefetch=0,
            grid=(M // tm, K // tk),
            in_specs=[
                pl.BlockSpec((tm, tk), lambda i, k: (i, k)),
                pl.BlockSpec((tk, Cout), lambda i, k: (k, 0)),
                pl.BlockSpec((1, Cout), lambda i, k: (0, 0)),
            ],
            out_specs=pl.BlockSpec((tm, Cout), lambda i, k: (i, 0)),
            scratch_shapes=[pltpu.VMEM((tm, Cout), jnp.float32)],
        )
        dims = ("parallel", "arbitrary")

    return pl.pallas_call(
        kernel,
        out_shape=out_shape,
        grid_spec=grid_spec,
        compiler_params=pltpu.CompilerParams(
            dimension_semantics=dims,
            vmem_limit_bytes=_VMEM_LIMIT,
        ),
        cost_estimate=cost,
    )(a, b, bias)


# ---------------------------------------------------------------------------
# Glue: GCN adjacency normalization + parameter prep + BasicGNN forward
# ---------------------------------------------------------------------------
def build_normalized_adjacency_padded(edge_index, num_nodes, padded_nodes):
    """Padded bf16 dense  D^{-1/2} (A + I) D^{-1/2}  built directly in the padded domain."""
    src, dst = edge_index[0], edge_index[1]
    a = jnp.zeros((padded_nodes, padded_nodes), jnp.float32)
    a = a.at[dst, src].set(1.0)                                   # message src -> dst
    idx = jnp.arange(num_nodes)
    a = a.at[idx, idx].max(1.0)                                   # self-loops on real nodes only
    deg = jnp.sum(a, axis=1)
    d_inv_sqrt = jnp.where(deg > 0, jax.lax.rsqrt(jnp.maximum(deg, 1.0)), 0.0)
    a = d_inv_sqrt[:, None] * a * d_inv_sqrt[None, :]
    return a.astype(jnp.bfloat16)


def init_basic_gnn_params(key, in_channels, hidden_channels, out_channels, num_layers):
    """Glorot-uniform weights + zero bias, mirroring BasicGNN.__init__ layer shapes."""
    dims = [in_channels] + [hidden_channels] * (num_layers - 1) + [out_channels]
    params = []
    for i in range(num_layers):
        key, sub = jax.random.split(key)
        cin, cout = dims[i], dims[i + 1]
        limit = (6.0 / (cin + cout)) ** 0.5
        w = jax.random.uniform(sub, (cin, cout), jnp.float32, -limit, limit)
        b = jnp.zeros((cout,), jnp.float32)
        params.append((w, b))
    return params


def prepare_padded_params(params, in_channels):
    """One-time lane-dense padding of (W, b) -> bf16 / f32; hoisted out of the forward pass."""
    prepared = []
    prev = _round_up(in_channels, _LANE)
    for w, b in params:
        cin, cout = w.shape
        cout_p = _round_up(cout, _LANE)
        w_pad = (
            jnp.zeros((prev, cout_p), jnp.bfloat16)
            .at[:cin, :cout]
            .set(w.astype(jnp.bfloat16))
        )
        b_pad = (
            jnp.zeros((1, cout_p), jnp.float32)
            .at[0, :cout]
            .set(b.astype(jnp.float32))
        )
        prepared.append((w_pad, b_pad))
        prev = cout_p
    return prepared


def basic_gnn_forward(prepared_params, x, edge_index, *, out_channels):
    """BasicGNN.forward: conv -> (norm=Identity, act=relu, dropout p=0) per hidden layer.

    Works in the zero-padded domain; padding sliced off at the end.
    """
    N, Cin = x.shape
    num_layers = len(prepared_params)
    Np = _pad_nodes(N)
    Cin_p = prepared_params[0][0].shape[0]

    a_pad = build_normalized_adjacency_padded(edge_index, N, Np)
    h = jnp.zeros((Np, Cin_p), jnp.bfloat16).at[:N, :Cin].set(x.astype(jnp.bfloat16))

    for i, (w_pad, b_pad) in enumerate(prepared_params):
        last = i == num_layers - 1
        cout_p = w_pad.shape[1]
        zero_bias = jnp.zeros((1, cout_p), jnp.float32)

        # 1) hoisted feature transform: XW = X @ W (computed exactly once per layer)
        xw = matmul_bias_act(h, w_pad, zero_bias, apply_relu=False, out_dtype=jnp.bfloat16)
        # 2) aggregation: A_norm @ XW + b (+ relu except after last layer);
        #    dropout(p=0) and norm=Identity are no-ops, jk=None.
        h = matmul_bias_act(a_pad, xw, b_pad, apply_relu=not last, out_dtype=jnp.bfloat16)

    return h[:N, :out_channels].astype(jnp.float32)


# ---------------------------------------------------------------------------
if __name__ == "__main__":
    key = jax.random.PRNGKey(0)

    N = 32               # number of nodes
    E = 64               # number of edges
    in_channels = 16
    hidden_channels = 32
    out_channels = 8
    num_layers = 3

    k_x, k_e, k_p = jax.random.split(key, 3)
    x = jax.random.normal(k_x, (N, in_channels), jnp.float32)
    edge_index = jax.random.randint(k_e, (2, E), 0, N, jnp.int32)

    params = init_basic_gnn_params(
        k_p, in_channels, hidden_channels, out_channels, num_layers
    )
    prepared = prepare_padded_params(params, in_channels)   # hoisted, one-time

    fwd = jax.jit(
        functools.partial(basic_gnn_forward, out_channels=out_channels)
    )
    out = fwd(prepared, x, edge_index)
    out = jax.block_until_ready(out)

    assert out.shape == (N, out_channels)
    assert bool(jnp.all(jnp.isfinite(out)))
    print("KERNEL_OK")
</pallas_src>

<mosaic_0001>
module attributes {stable_mosaic.version = 11 : i64} {
  func.func private @main(%arg0: i32) attributes {dimension_semantics = [#tpu.dimension_semantics<core_parallel>], iteration_bounds = array<i64: 2>, tpu.core_type = #tpu.core_type<sc_scalar_subcore>, window_params = []} {
    return
  }
}

module attributes {stable_mosaic.version = 11 : i64} {
  func.func private @main(%arg0: i32) attributes {dimension_semantics = [#tpu.dimension_semantics<core_parallel>], iteration_bounds = array<i64: 2>, tpu.core_type = #tpu.core_type<sc_scalar_subcore>, window_params = []} {
    return
  }
}

module attributes {stable_mosaic.version = 11 : i64} {
  func.func @_mm_single_kernel(%arg0: i32, %arg1: memref<128x128xbf16, #tpu.memory_space<vmem>>, %arg2: memref<128x128xbf16, #tpu.memory_space<vmem>>, %arg3: memref<1x128xf32, #tpu.memory_space<vmem>>, %arg4: memref<128x128xbf16, #tpu.memory_space<vmem>>) attributes {dimension_semantics = [#tpu.dimension_semantics<parallel>], iteration_bounds = array<i64: 1>, scalar_prefetch = 0 : i64, scratch_operands = 0 : i64, tpu.core_type = #tpu.core_type<tc>, window_params = [{transform_indices = @transform_0, window_bounds = array<i64: 128, 128>}, {pipeline_mode = #tpu.pipeline_mode<synchronous>, transform_indices = @transform_1, window_bounds = array<i64: 128, 128>}, {pipeline_mode = #tpu.pipeline_mode<synchronous>, transform_indices = @transform_2, window_bounds = array<i64: 1, 128>}, {transform_indices = @transform_3, window_bounds = array<i64: 128, 128>}]} {
    %c0 = arith.constant 0 : index
    %c0_0 = arith.constant 0 : index
    %0 = vector.load %arg1[%c0, %c0_0] : memref<128x128xbf16, #tpu.memory_space<vmem>>, vector<128x128xbf16>
    %c0_1 = arith.constant 0 : index
    %c0_2 = arith.constant 0 : index
    %1 = vector.load %arg2[%c0_1, %c0_2] : memref<128x128xbf16, #tpu.memory_space<vmem>>, vector<128x128xbf16>
    %cst = arith.constant dense<0.000000e+00> : vector<128x128xf32>
    %2 = tpu.matmul %0, %1, %cst {dimension_numbers = #tpu.dot_dimension_numbers<[1], [0], [0], [1], [0, 0, 1, 1], [], []>} : vector<128x128xbf16>, vector<128x128xbf16>, vector<128x128xf32> -> vector<128x128xf32>
    %c0_3 = arith.constant 0 : index
    %c0_4 = arith.constant 0 : index
    %3 = vector.load %arg3[%c0_3, %c0_4] : memref<1x128xf32, #tpu.memory_space<vmem>>, vector<1x128xf32>
    %4 = vector.broadcast %3 : vector<1x128xf32> to vector<128x128xf32>
    %5 = arith.addf %2, %4 : vector<128x128xf32>
    %6 = arith.truncf %5 : vector<128x128xf32> to vector<128x128xbf16>
    %c0_5 = arith.constant 0 : index
    %c0_6 = arith.constant 0 : index
    %7 = vector.load %arg4[%c0_5, %c0_6] : memref<128x128xbf16, #tpu.memory_space<vmem>>, vector<128x128xbf16>
    tpu.vector_store %arg4[%c0_5, %c0_6], %6 {strides = array<i32>} : memref<128x128xbf16, #tpu.memory_space<vmem>>, vector<128x128xbf16>,
    return
  }
  func.func @transform_0(%arg0: i32) -> (i32, i32) {
    %c0_i32 = arith.constant 0 : i32
    %c0_i32_0 = arith.constant 0 : i32
    return %arg0, %c0_i32 : i32, i32
  }
  func.func @transform_1(%arg0: i32) -> (i32, i32) {
    %c0_i32 = arith.constant 0 : i32
    %c0_i32_0 = arith.constant 0 : i32
    %c0_i32_1 = arith.constant 0 : i32
    return %c0_i32, %c0_i32_0 : i32, i32
  }
  func.func @transform_2(%arg0: i32) -> (i32, i32) {
    %c0_i32 = arith.constant 0 : i32
    %c0_i32_0 = arith.constant 0 : i32
    %c0_i32_1 = arith.constant 0 : i32
    return %c0_i32, %c0_i32_0 : i32, i32
  }
  func.func @transform_3(%arg0: i32) -> (i32, i32) {
    %c0_i32 = arith.constant 0 : i32
    %c0_i32_0 = arith.constant 0 : i32
    return %arg0, %c0_i32 : i32, i32
  }
}

module attributes {stable_mosaic.version = 11 : i64} {
  func.func @_mm_single_kernel(%arg0: i32, %arg1: memref<128x128xbf16, #tpu.memory_space<vmem>>, %arg2: memref<128x128xbf16, #tpu.memory_space<vmem>>, %arg3: memref<1x128xf32, #tpu.memory_space<vmem>>, %arg4: memref<128x128xbf16, #tpu.memory_space<vmem>>) attributes {dimension_semantics = [#tpu.dimension_semantics<parallel>], iteration_bounds = array<i64: 1>, scalar_prefetch = 0 : i64, scratch_operands = 0 : i64, tpu.core_type = #tpu.core_type<tc>, window_params = [{transform_indices = @transform_0, window_bounds = array<i64: 128, 128>}, {pipeline_mode = #tpu.pipeline_mode<synchronous>, transform_indices = @transform_1, window_bounds = array<i64: 128, 128>}, {pipeline_mode = #tpu.pipeline_mode<synchronous>, transform_indices = @transform_2, window_bounds = array<i64: 1, 128>}, {transform_indices = @transform_3, window_bounds = array<i64: 128, 128>}]} {
    %c0 = arith.constant 0 : index
    %c0_0 = arith.constant 0 : index
    %0 = vector.load %arg1[%c0, %c0_0] : memref<128x128xbf16, #tpu.memory_space<vmem>>, vector<128x128xbf16>
    %c0_1 = arith.constant 0 : index
    %c0_2 = arith.constant 0 : index
    %1 = vector.load %arg2[%c0_1, %c0_2] : memref<128x128xbf16, #tpu.memory_space<vmem>>, vector<128x128xbf16>
    %cst = arith.constant dense<0.000000e+00> : vector<128x128xf32>
    %2 = tpu.matmul %0, %1, %cst {dimension_numbers = #tpu.dot_dimension_numbers<[1], [0], [0], [1], [0, 0, 1, 1], [], []>} : vector<128x128xbf16>, vector<128x128xbf16>, vector<128x128xf32> -> vector<128x128xf32>
    %c0_3 = arith.constant 0 : index
    %c0_4 = arith.constant 0 : index
    %3 = vector.load %arg3[%c0_3, %c0_4] : memref<1x128xf32, #tpu.memory_space<vmem>>, vector<1x128xf32>
    %4 = vector.broadcast %3 : vector<1x128xf32> to vector<128x128xf32>
    %5 = arith.addf %2, %4 : vector<128x128xf32>
    %cst_5 = arith.constant 0.000000e+00 : f32
    %6 = vector.broadcast %cst_5 : f32 to vector<128x128xf32>
    %7 = arith.maximumf %5, %6 : vector<128x128xf32>
    %8 = arith.truncf %7 : vector<128x128xf32> to vector<128x128xbf16>
    %c0_6 = arith.constant 0 : index
    %c0_7 = arith.constant 0 : index
    %9 = vector.load %arg4[%c0_6, %c0_7] : memref<128x128xbf16, #tpu.memory_space<vmem>>, vector<128x128xbf16>
    tpu.vector_store %arg4[%c0_6, %c0_7], %8 {strides = array<i32>} : memref<128x128xbf16, #tpu.memory_space<vmem>>, vector<128x128xbf16>,
    return
  }
  func.func @transform_0(%arg0: i32) -> (i32, i32) {
    %c0_i32 = arith.constant 0 : i32
    %c0_i32_0 = arith.constant 0 : i32
    return %arg0, %c0_i32 : i32, i32
  }
  func.func @transform_1(%arg0: i32) -> (i32, i32) {
    %c0_i32 = arith.constant 0 : i32
    %c0_i32_0 = arith.constant 0 : i32
    %c0_i32_1 = arith.constant 0 : i32
    return %c0_i32, %c0_i32_0 : i32, i32
  }
  func.func @transform_2(%arg0: i32) -> (i32, i32) {
    %c0_i32 = arith.constant 0 : i32
    %c0_i32_0 = arith.constant 0 : i32
    %c0_i32_1 = arith.constant 0 : i32
    return %c0_i32, %c0_i32_0 : i32, i32
  }
  func.func @transform_3(%arg0: i32) -> (i32, i32) {
    %c0_i32 = arith.constant 0 : i32
    %c0_i32_0 = arith.constant 0 : i32
    return %arg0, %c0_i32 : i32, i32
  }
}

</mosaic_0001>

<bundles_post_ra>
// kernel: basic_gnn_forward.7
= control target key start
LH: loop header
LB: loop body
LE: loop exit
PB: predicated region body
PF: predicated region fallthrough
CT: control target
= control target key end

     0   :  { %s618_s1 = inlined_call_operand.vmem [shape: bf16[128,128], index: 1, kind: input, shape index: {}]   ;;  %s619_s0 = inlined_call_operand.vmem [shape: bf16[128,128], index: 0, kind: input, shape index: {}]   ;;  %s620_s2 = inlined_call_operand.vmem [shape: f32[1,128], index: 2, kind: input, shape index: {}]   ;;  %s621_s3 = inlined_call_operand.vmem [shape: bf16[128,128], index: 3, kind: output, shape index: {}]  }
   0x1   :  { %v507_v0 = vld [vmem:[%s618_s1] sm:$0xff]   ;;  %v508_v1 = vld [vmem:[%s618_s1 + $0x8] sm:$0xff]   ;;  %v509_v2 = vld [vmem:[%s618_s1 + $0x10] sm:$0xff]  }
   0x2   :  { %459 = vmatprep.subr.bf16.mxu0 %v507_v0  ;;  %491 = vmatprep.subr.bf16.mxu1 %v507_v0  ;;  %v510_v3 = vld [vmem:[%s618_s1 + $0x18] sm:$0xff]   ;;  %v515_v4 = vld [vmem:[%s619_s0] sm:$0xff]   ;;  %v512_v7 = vld [vmem:[%s618_s1 + $0x28] sm:$0xff]  }
   0x3   :  { %460 = vmatpush3.bf16.msra.mxu0 %v507_v0  ;;  %499 = vmatpush3.bf16.msra.mxu1 %v507_v0  ;;  %v516_v5 = vld [vmem:[%s619_s0 + $0x20] sm:$0xff]   ;;  %v513_v8 = vld [vmem:[%s618_s1 + $0x30] sm:$0xff]   ;;  %v514_v9 = vld [vmem:[%s618_s1 + $0x38] sm:$0xff]  }
   0x4   :  { %461 = vmatprep.subr.bf16.mxu0 %v508_v1  ;;  %492 = vmatprep.subr.bf16.mxu1 %v508_v1  ;;  %v511_v6 = vld [vmem:[%s618_s1 + $0x20] sm:$0xff]   ;;  %v517_v10 = vld [vmem:[%s619_s0 + $0x8] sm:$0xff]   ;;  %v519_v12 = vld [vmem:[%s619_s0 + $0x10] sm:$0xff]  }
   0x5   :  { %475 = vmatprep.mubr.bf16.mxu0 %v515_v4  ;;  %483 = vmatprep.mubr.bf16.mxu1 %v516_v5  ;;  %v518_v11 = vld [vmem:[%s619_s0 + $0x28] sm:$0xff]   ;;  %v520_v13 = vld [vmem:[%s619_s0 + $0x30] sm:$0xff]   ;;  %v521_v14 = vld [vmem:[%s619_s0 + $0x18] sm:$0xff]  }
   0x6   :  { %v522_v15 = vld [vmem:[%s619_s0 + $0x38] sm:$0xff]   ;;  %v347_v16 = vld [vmem:[%s620_s2] ss:$0 sm:$0xff] }
   0x7   :  { %462 = vmatpush3.bf16.msra.mxu0 %v508_v1  ;;  %500 = vmatpush3.bf16.msra.mxu1 %v508_v1 }
   0x8   :  { %463 = vmatprep.subr.bf16.mxu0 %v509_v2  ;;  %493 = vmatprep.subr.bf16.mxu1 %v509_v2 }
   0xb   :  { %464 = vmatpush3.bf16.msra.mxu0 %v509_v2  ;;  %501 = vmatpush3.bf16.msra.mxu1 %v509_v2 }
   0xc   :  { %465 = vmatprep.subr.bf16.mxu0 %v510_v3  ;;  %494 = vmatprep.subr.bf16.mxu1 %v510_v3 }
   0xf   :  { %466 = vmatpush3.bf16.msra.mxu0 %v510_v3  ;;  %502 = vmatpush3.bf16.msra.mxu1 %v510_v3 }
  0x10   :  { %467 = vmatprep.subr.bf16.mxu0 %v511_v6  ;;  %495 = vmatprep.subr.bf16.mxu1 %v511_v6 }
  0x13   :  { %468 = vmatpush3.bf16.msra.mxu0 %v511_v6  ;;  %503 = vmatpush3.bf16.msra.mxu1 %v511_v6 }
  0x14   :  { %469 = vmatprep.subr.bf16.mxu0 %v512_v7  ;;  %496 = vmatprep.subr.bf16.mxu1 %v512_v7 }
  0x17   :  { %470 = vmatpush3.bf16.msra.mxu0 %v512_v7  ;;  %504 = vmatpush3.bf16.msra.mxu1 %v512_v7 }
  0x18   :  { %471 = vmatprep.subr.bf16.mxu0 %v513_v8  ;;  %497 = vmatprep.subr.bf16.mxu1 %v513_v8 }
  0x1b   :  { %472 = vmatpush3.bf16.msra.mxu0 %v513_v8  ;;  %505 = vmatpush3.bf16.msra.mxu1 %v513_v8 }
  0x1c   :  { %473 = vmatprep.subr.bf16.mxu0 %v514_v9  ;;  %498 = vmatprep.subr.bf16.mxu1 %v514_v9 }
  0x1f   :  { %474 = vmatpush3.bf16.msra.mxu0 %v514_v9  ;;  %506 = vmatpush3.bf16.msra.mxu1 %v514_v9 }
  0x22   :  { %476 = vmatmul.mubr.bf16.vlgmr.msra.gmra.mrb[0].mxu0 %v517_v10  ;;  %484 = vmatmul.mubr.bf16.vlgmr.msra.gmra.mrb[0].mxu1 %v518_v11 }
  0x23   :  { %479 = vmatprep.mubr.bf16.mxu0 %v519_v12  ;;  %487 = vmatprep.mubr.bf16.mxu1 %v520_v13 }
  0x2a   :  { %480 = vmatmul.mubr.bf16.gmra.mrb[4].mxu0 %v521_v14  ;;  %488 = vmatmul.mubr.bf16.gmra.mrb[4].mxu1 %v522_v15 }
  0xf5   :  { %v477_v17 = vpop.f32.mrb[0].mxu0  ;;  %v485_v18 = vpop.f32.mrb[0].mxu1 }
  0xf6   :  { %v193_v19 = vadd.f32 %v477_v17, %v347_v16  ;;  %v225_v20 = vadd.f32 %v485_v18, %v347_v16  ;;  %v184_v21 = vpop.f32.mrb[1].mxu0  ;;  %v216_v22 = vpop.f32.mrb[1].mxu1 }
  0xf7   :  { %v185_v23 = vadd.f32 %v347_v16, %v184_v21  ;;  %v217_v24 = vadd.f32 %v347_v16, %v216_v22  ;;  %v478_v25 = vpop.f32.mrb[2].mxu0  ;;  %v486_v26 = vpop.f32.mrb[2].mxu1 }
  0xf8   :  { %v196_v27 = vadd.f32 %v478_v25, %v347_v16  ;;  %v228_v28 = vadd.f32 %v486_v26, %v347_v16  ;;  %v187_v29 = vpop.f32.mrb[3].mxu0  ;;  %v219_v30 = vpop.f32.mrb[3].mxu1  ;;  %v249_v33 = vmax.f32 %v193_v19, 0.0  ;;  %v257_v34 = vmax.f32 %v225_v20, 0.0 }
  0xf9   :  { %v188_v31 = vadd.f32 %v347_v16, %v187_v29  ;;  %v220_v32 = vadd.f32 %v347_v16, %v219_v30  ;;  %v247_v37 = vmax.f32 %v185_v23, 0.0  ;;  %v255_v38 = vmax.f32 %v217_v24, 0.0 }
  0xfa   :  { %v250_v35 = vmax.f32 %v196_v27, 0.0  ;;  %v258_v36 = vmax.f32 %v228_v28, 0.0 }
  0xfb   :  { %v248_v39 = vmax.f32 %v188_v31, 0.0  ;;  %v256_v40 = vmax.f32 %v220_v32, 0.0 }
  0xfc   :  { %v404_v41 = vpack.c.bf16 %v250_v35, %v249_v33  ;;  %v424_v42 = vpack.c.bf16 %v258_v36, %v257_v34 }
  0xfd   :  { %v399_v43 = vpack.c.bf16 %v248_v39, %v247_v37  ;;  %v419_v44 = vpack.c.bf16 %v256_v40, %v255_v38  ;;  %v481_v45 = vpop.f32.mrb[4].mxu0  ;;  %v489_v46 = vpop.f32.mrb[4].mxu1 }
  0xfe   :  { %436 = vst [vmem:[%s621_s3 + $0x8] sm:$0xff] %v404_v41   ;;  %440 = vst [vmem:[%s621_s3 + $0x28] sm:$0xff] %v424_v42   ;;  %v209_v47 = vadd.f32 %v481_v45, %v347_v16  ;;  %v241_v48 = vadd.f32 %v489_v46, %v347_v16  ;;  %v200_v49 = vpop.f32.mrb[5].mxu0  ;;  %v232_v50 = vpop.f32.mrb[5].mxu1 }
  0xff   :  { %400 = vst [vmem:[%s621_s3] sm:$0xff] %v399_v43   ;;  %439 = vst [vmem:[%s621_s3 + $0x20] sm:$0xff] %v419_v44   ;;  %v201_v51 = vadd.f32 %v347_v16, %v200_v49  ;;  %v233_v52 = vadd.f32 %v347_v16, %v232_v50  ;;  %v482_v53 = vpop.f32.mrb[6].mxu0  ;;  %v490_v54 = vpop.f32.mrb[6].mxu1 }
 0x100   :  { %v212_v55 = vadd.f32 %v482_v53, %v347_v16  ;;  %v244_v56 = vadd.f32 %v490_v54, %v347_v16  ;;  %v203_v57 = vpop.f32.mrb[7].mxu0  ;;  %v235_v58 = vpop.f32.mrb[7].mxu1  ;;  %v253_v61 = vmax.f32 %v209_v47, 0.0  ;;  %v261_v62 = vmax.f32 %v241_v48, 0.0 }
 0x101   :  { %v204_v59 = vadd.f32 %v347_v16, %v203_v57  ;;  %v236_v60 = vadd.f32 %v347_v16, %v235_v58  ;;  %v251_v1 = vmax.f32 %v201_v51, 0.0  ;;  %v259_v2 = vmax.f32 %v233_v52, 0.0 }
 0x102   :  { %v254_v63 = vmax.f32 %v212_v55, 0.0  ;;  %v262_v0 = vmax.f32 %v244_v56, 0.0 }
 0x103   :  { %v252_v3 = vmax.f32 %v204_v59, 0.0  ;;  %v260_v4 = vmax.f32 %v236_v60, 0.0 }
 0x104   :  { %v414_v5 = vpack.c.bf16 %v254_v63, %v253_v61  ;;  %v434_v6 = vpack.c.bf16 %v262_v0, %v261_v62 }
 0x105   :  { %v409_v7 = vpack.c.bf16 %v252_v3, %v251_v1  ;;  %v429_v8 = vpack.c.bf16 %v260_v4, %v259_v2 }
 0x106   :  { %438 = vst [vmem:[%s621_s3 + $0x18] sm:$0xff] %v414_v5   ;;  %442 = vst [vmem:[%s621_s3 + $0x38] sm:$0xff] %v434_v6  }
 0x107   :  { %437 = vst [vmem:[%s621_s3 + $0x10] sm:$0xff] %v409_v7   ;;  %441 = vst [vmem:[%s621_s3 + $0x30] sm:$0xff] %v429_v8  }

// kernel: basic_gnn_forward.6
= control target key start
LH: loop header
LB: loop body
LE: loop exit
PB: predicated region body
PF: predicated region fallthrough
CT: control target
= control target key end

     0   :  { %s602_s1 = inlined_call_operand.vmem [shape: bf16[128,128], index: 1, kind: input, shape index: {}]   ;;  %s603_s0 = inlined_call_operand.vmem [shape: bf16[128,128], index: 0, kind: input, shape index: {}]   ;;  %s604_s2 = inlined_call_operand.vmem [shape: f32[1,128], index: 2, kind: input, shape index: {}]   ;;  %s605_s3 = inlined_call_operand.vmem [shape: bf16[128,128], index: 3, kind: output, shape index: {}]  }
   0x1   :  { %v491_v0 = vld [vmem:[%s602_s1] sm:$0xff]   ;;  %v492_v1 = vld [vmem:[%s602_s1 + $0x8] sm:$0xff]   ;;  %v493_v2 = vld [vmem:[%s602_s1 + $0x10] sm:$0xff]  }
   0x2   :  { %443 = vmatprep.subr.bf16.mxu0 %v491_v0  ;;  %475 = vmatprep.subr.bf16.mxu1 %v491_v0  ;;  %v494_v3 = vld [vmem:[%s602_s1 + $0x18] sm:$0xff]   ;;  %v499_v4 = vld [vmem:[%s603_s0] sm:$0xff]   ;;  %v496_v7 = vld [vmem:[%s602_s1 + $0x28] sm:$0xff]  }
   0x3   :  { %444 = vmatpush3.bf16.msra.mxu0 %v491_v0  ;;  %483 = vmatpush3.bf16.msra.mxu1 %v491_v0  ;;  %v500_v5 = vld [vmem:[%s603_s0 + $0x20] sm:$0xff]   ;;  %v497_v8 = vld [vmem:[%s602_s1 + $0x30] sm:$0xff]   ;;  %v498_v9 = vld [vmem:[%s602_s1 + $0x38] sm:$0xff]  }
   0x4   :  { %445 = vmatprep.subr.bf16.mxu0 %v492_v1  ;;  %476 = vmatprep.subr.bf16.mxu1 %v492_v1  ;;  %v495_v6 = vld [vmem:[%s602_s1 + $0x20] sm:$0xff]   ;;  %v501_v10 = vld [vmem:[%s603_s0 + $0x8] sm:$0xff]   ;;  %v503_v12 = vld [vmem:[%s603_s0 + $0x10] sm:$0xff]  }
   0x5   :  { %459 = vmatprep.mubr.bf16.mxu0 %v499_v4  ;;  %467 = vmatprep.mubr.bf16.mxu1 %v500_v5  ;;  %v502_v11 = vld [vmem:[%s603_s0 + $0x28] sm:$0xff]   ;;  %v504_v13 = vld [vmem:[%s603_s0 + $0x30] sm:$0xff]   ;;  %v505_v14 = vld [vmem:[%s603_s0 + $0x18] sm:$0xff]  }
   0x6   :  { %v506_v15 = vld [vmem:[%s603_s0 + $0x38] sm:$0xff]   ;;  %v331_v17 = vld [vmem:[%s604_s2] ss:$0 sm:$0xff] }
   0x7   :  { %446 = vmatpush3.bf16.msra.mxu0 %v492_v1  ;;  %484 = vmatpush3.bf16.msra.mxu1 %v492_v1 }
   0x8   :  { %447 = vmatprep.subr.bf16.mxu0 %v493_v2  ;;  %477 = vmatprep.subr.bf16.mxu1 %v493_v2 }
   0xb   :  { %448 = vmatpush3.bf16.msra.mxu0 %v493_v2  ;;  %485 = vmatpush3.bf16.msra.mxu1 %v493_v2 }
   0xc   :  { %449 = vmatprep.subr.bf16.mxu0 %v494_v3  ;;  %478 = vmatprep.subr.bf16.mxu1 %v494_v3 }
   0xf   :  { %450 = vmatpush3.bf16.msra.mxu0 %v494_v3  ;;  %486 = vmatpush3.bf16.msra.mxu1 %v494_v3 }
  0x10   :  { %451 = vmatprep.subr.bf16.mxu0 %v495_v6  ;;  %479 = vmatprep.subr.bf16.mxu1 %v495_v6 }
  0x13   :  { %452 = vmatpush3.bf16.msra.mxu0 %v495_v6  ;;  %487 = vmatpush3.bf16.msra.mxu1 %v495_v6 }
  0x14   :  { %453 = vmatprep.subr.bf16.mxu0 %v496_v7  ;;  %480 = vmatprep.subr.bf16.mxu1 %v496_v7 }
  0x17   :  { %454 = vmatpush3.bf16.msra.mxu0 %v496_v7  ;;  %488 = vmatpush3.bf16.msra.mxu1 %v496_v7 }
  0x18   :  { %455 = vmatprep.subr.bf16.mxu0 %v497_v8  ;;  %481 = vmatprep.subr.bf16.mxu1 %v497_v8 }
  0x1b   :  { %456 = vmatpush3.bf16.msra.mxu0 %v497_v8  ;;  %489 = vmatpush3.bf16.msra.mxu1 %v497_v8 }
  0x1c   :  { %457 = vmatprep.subr.bf16.mxu0 %v498_v9  ;;  %482 = vmatprep.subr.bf16.mxu1 %v498_v9 }
  0x1f   :  { %458 = vmatpush3.bf16.msra.mxu0 %v498_v9  ;;  %490 = vmatpush3.bf16.msra.mxu1 %v498_v9 }
  0x22   :  { %460 = vmatmul.mubr.bf16.vlgmr.msra.gmra.mrb[0].mxu0 %v501_v10  ;;  %468 = vmatmul.mubr.bf16.vlgmr.msra.gmra.mrb[0].mxu1 %v502_v11 }
  0x23   :  { %463 = vmatprep.mubr.bf16.mxu0 %v503_v12  ;;  %471 = vmatprep.mubr.bf16.mxu1 %v504_v13 }
  0x2a   :  { %464 = vmatmul.mubr.bf16.gmra.mrb[4].mxu0 %v505_v14  ;;  %472 = vmatmul.mubr.bf16.gmra.mrb[4].mxu1 %v506_v15 }
  0xf5   :  { %v461_v16 = vpop.f32.mrb[0].mxu0  ;;  %v469_v18 = vpop.f32.mrb[0].mxu1 }
  0xf6   :  { %v184_v19 = vpop.f32.mrb[1].mxu0  ;;  %v216_v20 = vpop.f32.mrb[1].mxu1  ;;  %v193_v23 = vadd.f32 %v461_v16, %v331_v17  ;;  %v225_v24 = vadd.f32 %v469_v18, %v331_v17 }
  0xf7   :  { %v462_v21 = vpop.f32.mrb[2].mxu0  ;;  %v470_v22 = vpop.f32.mrb[2].mxu1  ;;  %v185_v29 = vadd.f32 %v331_v17, %v184_v19  ;;  %v217_v30 = vadd.f32 %v331_v17, %v216_v20 }
  0xf8   :  { %v196_v25 = vadd.f32 %v462_v21, %v331_v17  ;;  %v228_v26 = vadd.f32 %v470_v22, %v331_v17  ;;  %v187_v27 = vpop.f32.mrb[3].mxu0  ;;  %v219_v28 = vpop.f32.mrb[3].mxu1 }
  0xf9   :  { %v188_v31 = vadd.f32 %v331_v17, %v187_v27  ;;  %v220_v32 = vadd.f32 %v331_v17, %v219_v28 }
  0xfa   :  { %v388_v33 = vpack.c.bf16 %v196_v25, %v193_v23  ;;  %v408_v34 = vpack.c.bf16 %v228_v26, %v225_v24 }
  0xfb   :  { %v383_v35 = vpack.c.bf16 %v188_v31, %v185_v29  ;;  %v403_v36 = vpack.c.bf16 %v220_v32, %v217_v30 }
  0xfc   :  { %420 = vst [vmem:[%s605_s3 + $0x8] sm:$0xff] %v388_v33   ;;  %424 = vst [vmem:[%s605_s3 + $0x28] sm:$0xff] %v408_v34  }
  0xfd   :  { %384 = vst [vmem:[%s605_s3] sm:$0xff] %v383_v35   ;;  %423 = vst [vmem:[%s605_s3 + $0x20] sm:$0xff] %v403_v36   ;;  %v465_v37 = vpop.f32.mrb[4].mxu0  ;;  %v473_v38 = vpop.f32.mrb[4].mxu1 }
  0xfe   :  { %v200_v39 = vpop.f32.mrb[5].mxu0  ;;  %v232_v40 = vpop.f32.mrb[5].mxu1  ;;  %v209_v43 = vadd.f32 %v465_v37, %v331_v17  ;;  %v241_v44 = vadd.f32 %v473_v38, %v331_v17 }
  0xff   :  { %v466_v41 = vpop.f32.mrb[6].mxu0  ;;  %v474_v42 = vpop.f32.mrb[6].mxu1  ;;  %v201_v49 = vadd.f32 %v331_v17, %v200_v39  ;;  %v233_v50 = vadd.f32 %v331_v17, %v232_v40 }
 0x100   :  { %v212_v45 = vadd.f32 %v466_v41, %v331_v17  ;;  %v244_v46 = vadd.f32 %v474_v42, %v331_v17  ;;  %v203_v47 = vpop.f32.mrb[7].mxu0  ;;  %v235_v48 = vpop.f32.mrb[7].mxu1 }
 0x101   :  { %v204_v51 = vadd.f32 %v331_v17, %v203_v47  ;;  %v236_v52 = vadd.f32 %v331_v17, %v235_v48 }
 0x102   :  { %v398_v53 = vpack.c.bf16 %v212_v45, %v209_v43  ;;  %v418_v54 = vpack.c.bf16 %v244_v46, %v241_v44 }
 0x103   :  { %v393_v55 = vpack.c.bf16 %v204_v51, %v201_v49  ;;  %v413_v56 = vpack.c.bf16 %v236_v52, %v233_v50 }
 0x104   :  { %422 = vst [vmem:[%s605_s3 + $0x18] sm:$0xff] %v398_v53   ;;  %426 = vst [vmem:[%s605_s3 + $0x38] sm:$0xff] %v418_v54  }
 0x105   :  { %421 = vst [vmem:[%s605_s3 + $0x10] sm:$0xff] %v393_v55   ;;  %425 = vst [vmem:[%s605_s3 + $0x30] sm:$0xff] %v413_v56  }

</bundles_post_ra>
